<compile_context>
chip_gen: v7x
topology: tpu7x:2x2x1
jax: 0.10.0
libtpu: 0.0.40
codegen_flags: <defaults>
</compile_context>

<pallas_src>
import math

import jax
import jax.numpy as jnp
from jax.experimental import pallas as pl
from jax.experimental.pallas import tpu as pltpu

_TWO_PI = 2.0 * math.pi
_PREKAPPA0 = 16.0


def _round_up(a, b):
    return (a + b - 1) // b * b


def _vmf_kernel(c_ref, x_ref, w_ref, out_ref):
    """One lane-axis tile of the vMF mixture density.

    c_ref   : (K, 8)        [mu_x, mu_y, mu_z, kappa, c, pad, pad, pad]
    x_ref   : (3, TN)       unit-vector components
    w_ref   : (K, TN)       mixture weights
    out_ref : (1, TN)       mixture probabilities
    """
    x0 = x_ref[0:1, :]                       # (1, TN)
    x1 = x_ref[1:2, :]
    x2 = x_ref[2:3, :]

    mu_x = c_ref[:, 0:1]                     # (K, 1)
    mu_y = c_ref[:, 1:2]
    mu_z = c_ref[:, 2:3]
    kappa = c_ref[:, 3:4]
    logc = c_ref[:, 4:5]

    # cosine similarity via three VPU FMAs (contraction of length 3 -> no MXU)
    dot = mu_x * x0 + mu_y * x1 + mu_z * x2          # (K, TN)

    # vMF density in log-space: exactly one transcendental per element, no div
    dens = jnp.exp(kappa * dot + logc)               # (K, TN)

    # weighted sum over mixtures (cheap sublane reduce) + epsilon
    out_ref[...] = jnp.sum(w_ref[...] * dens, axis=0, keepdims=True) + 1e-9


def mixture_vmf_forward(x, mixture_weights, mus, kappas,
                        prekappa0=_PREKAPPA0, *, block_n=1024):
    """Pallas TPU implementation of VectorizedMixtureVMF.forward.

    x                : (N, 3) float  unit vectors
    mixture_weights  : (N, K) float
    mus              : (2, K) lat/lon parameters
    kappas           : (K,)   pre-kappa parameters
    returns          : (N,)   probabilities
    """
    N = x.shape[0]
    K = kappas.shape[0]

    # --- O(K) glue (plain JAX): lat/lon -> cartesian, log-space normalizer ---
    lat = mus[0, :].astype(jnp.float32)
    lon = mus[1, :].astype(jnp.float32)
    mu_x = jnp.cos(lat) * jnp.cos(lon)
    mu_y = jnp.cos(lat) * jnp.sin(lon)
    mu_z = jnp.sin(lat)
    prekap = kappas.astype(jnp.float32) + jnp.float32(prekappa0)
    kappa = jnp.exp(prekap)
    # log(kappa) == prekap exactly; -expm1 avoids 1 - exp(-2k) cancellation.
    c = prekap - kappa - jnp.log(_TWO_PI * (-jnp.expm1(-2.0 * kappa)))
    zeros = jnp.zeros_like(kappa)
    consts = jnp.stack([mu_x, mu_y, mu_z, kappa, c,
                        zeros, zeros, zeros], axis=1)          # (K, 8)

    # --- lane-dense layout: batch N on the 128-wide lane axis -----------------
    block_n = _round_up(max(128, min(block_n, _round_up(N, 128))), 128)
    n_pad = _round_up(N, block_n)
    pad = n_pad - N
    xT = jnp.pad(x.astype(jnp.float32).T, ((0, 0), (0, pad)))             # (3, N_pad)
    wT = jnp.pad(mixture_weights.astype(jnp.float32).T, ((0, 0), (0, pad)))  # (K, N_pad)

    grid = (n_pad // block_n,)

    # VMEM budget: double-buffered x/w/out tiles + resident consts + headroom.
    tile_bytes = (3 + K + 1) * block_n * 4
    vmem_limit = int(min(max(4 * tile_bytes + K * 32 + (4 << 20), 16 << 20),
                         48 << 20))   # stay safe on v7x's 64 MiB VMEM per TC

    out = pl.pallas_call(
        _vmf_kernel,
        out_shape=jax.ShapeDtypeStruct((1, n_pad), jnp.float32),
        grid_spec=pltpu.PrefetchScalarGridSpec(
            num_scalar_prefetch=0,
            grid=grid,
            in_specs=[
                pl.BlockSpec((K, 8), lambda i: (0, 0)),          # consts (resident)
                pl.BlockSpec((3, block_n), lambda i: (0, i)),    # xT tile
                pl.BlockSpec((K, block_n), lambda i: (0, i)),    # wT tile
            ],
            out_specs=pl.BlockSpec((1, block_n), lambda i: (0, i)),  # lane-dense out
        ),
        compiler_params=pltpu.CompilerParams(
            dimension_semantics=("parallel",),
            vmem_limit_bytes=vmem_limit),
    )(consts, xT, wT)
    return out[0, :N]


def _reference(x, mixture_weights, mus, kappas, prekappa0=_PREKAPPA0):
    """Pure-JAX reference mirroring the PyTorch forward (in f32)."""
    lat, lon = mus[0, :], mus[1, :]
    mus3d = jnp.stack(
        [jnp.cos(lat) * jnp.cos(lon),
         jnp.cos(lat) * jnp.sin(lon),
         jnp.sin(lat)], axis=0).astype(jnp.float32)
    kappa = jnp.exp(kappas.astype(jnp.float32) + prekappa0)
    dot = x.astype(jnp.float32) @ mus3d
    dens = kappa * jnp.exp(kappa * (dot - 1.0)) / (
        _TWO_PI * (1.0 - jnp.exp(-2.0 * kappa)))
    return 1e-9 + jnp.sum(dens * mixture_weights.astype(jnp.float32), axis=1)


if __name__ == "__main__":
    N, K = 16, 8

    key = jax.random.PRNGKey(0)
    k_lat, k_lon, k_kap, k_x, k_w = jax.random.split(key, 5)

    # --- deterministic parameter init (shapes from module __init__) ----------
    # mus: (2, K) lat/lon ; kappas: (K,)
    mus = jnp.stack([
        jax.random.uniform(k_lat, (K,), minval=-math.pi / 2, maxval=math.pi / 2),
        jax.random.uniform(k_lon, (K,), minval=-math.pi, maxval=math.pi),
    ], axis=0)
    # kappas around -13 so effective kappa = exp(kappas + 16) is ~e^3 (non-trivial)
    kappas = -13.0 + 0.1 * jax.random.normal(k_kap, (K,))

    # --- example inputs -------------------------------------------------------
    xr = jax.random.normal(k_x, (N, 3))
    x = xr / jnp.linalg.norm(xr, axis=1, keepdims=True)           # unit vectors
    mixture_weights = jax.nn.softmax(jax.random.normal(k_w, (N, K)), axis=1)

    probs = mixture_vmf_forward(x, mixture_weights, mus, kappas)
    probs = jax.block_until_ready(probs)

    ref = _reference(x, mixture_weights, mus, kappas)
    assert probs.shape == (N,)
    assert jnp.allclose(probs, ref, rtol=1e-4, atol=1e-6), (probs, ref)

    print("KERNEL_OK")
</pallas_src>

<mosaic_0001>
module attributes {stable_mosaic.version = 11 : i64} {
  func.func @_vmf_kernel(%arg0: i32, %arg1: memref<8x8xf32, #tpu.memory_space<vmem>>, %arg2: memref<3x128xf32, #tpu.memory_space<vmem>>, %arg3: memref<8x128xf32, #tpu.memory_space<vmem>>, %arg4: memref<1x128xf32, #tpu.memory_space<vmem>>) attributes {dimension_semantics = [#tpu.dimension_semantics<parallel>], iteration_bounds = array<i64: 1>, scalar_prefetch = 0 : i64, scratch_operands = 0 : i64, tpu.core_type = #tpu.core_type<tc>, window_params = [{pipeline_mode = #tpu.pipeline_mode<synchronous>, transform_indices = @transform_0, window_bounds = array<i64: 8, 8>}, {transform_indices = @transform_1, window_bounds = array<i64: 3, 128>}, {transform_indices = @transform_2, window_bounds = array<i64: 8, 128>}, {transform_indices = @transform_3, window_bounds = array<i64: 1, 128>}]} {
    %c0 = arith.constant 0 : index
    %c0_0 = arith.constant 0 : index
    %0 = vector.load %arg2[%c0, %c0_0] : memref<3x128xf32, #tpu.memory_space<vmem>>, vector<1x128xf32>
    %c1 = arith.constant 1 : index
    %c0_1 = arith.constant 0 : index
    %1 = vector.load %arg2[%c1, %c0_1] : memref<3x128xf32, #tpu.memory_space<vmem>>, vector<1x128xf32>
    %c2 = arith.constant 2 : index
    %c0_2 = arith.constant 0 : index
    %2 = vector.load %arg2[%c2, %c0_2] : memref<3x128xf32, #tpu.memory_space<vmem>>, vector<1x128xf32>
    %c0_3 = arith.constant 0 : index
    %c0_4 = arith.constant 0 : index
    %3 = vector.load %arg1[%c0_3, %c0_4] : memref<8x8xf32, #tpu.memory_space<vmem>>, vector<8x1xf32>
    %c0_5 = arith.constant 0 : index
    %c1_6 = arith.constant 1 : index
    %4 = vector.load %arg1[%c0_5, %c1_6] : memref<8x8xf32, #tpu.memory_space<vmem>>, vector<8x1xf32>
    %c0_7 = arith.constant 0 : index
    %c2_8 = arith.constant 2 : index
    %5 = vector.load %arg1[%c0_7, %c2_8] : memref<8x8xf32, #tpu.memory_space<vmem>>, vector<8x1xf32>
    %c0_9 = arith.constant 0 : index
    %c3 = arith.constant 3 : index
    %6 = vector.load %arg1[%c0_9, %c3] : memref<8x8xf32, #tpu.memory_space<vmem>>, vector<8x1xf32>
    %c0_10 = arith.constant 0 : index
    %c4 = arith.constant 4 : index
    %7 = vector.load %arg1[%c0_10, %c4] : memref<8x8xf32, #tpu.memory_space<vmem>>, vector<8x1xf32>
    %8 = vector.broadcast %3 : vector<8x1xf32> to vector<8x128xf32>
    %9 = vector.broadcast %0 : vector<1x128xf32> to vector<8x128xf32>
    %10 = arith.mulf %8, %9 : vector<8x128xf32>
    %11 = vector.broadcast %4 : vector<8x1xf32> to vector<8x128xf32>
    %12 = vector.broadcast %1 : vector<1x128xf32> to vector<8x128xf32>
    %13 = arith.mulf %11, %12 : vector<8x128xf32>
    %14 = arith.addf %10, %13 : vector<8x128xf32>
    %15 = vector.broadcast %5 : vector<8x1xf32> to vector<8x128xf32>
    %16 = vector.broadcast %2 : vector<1x128xf32> to vector<8x128xf32>
    %17 = arith.mulf %15, %16 : vector<8x128xf32>
    %18 = arith.addf %14, %17 : vector<8x128xf32>
    %19 = vector.broadcast %6 : vector<8x1xf32> to vector<8x128xf32>
    %20 = arith.mulf %19, %18 : vector<8x128xf32>
    %21 = vector.broadcast %7 : vector<8x1xf32> to vector<8x128xf32>
    %22 = arith.addf %20, %21 : vector<8x128xf32>
    %23 = math.exp %22 : vector<8x128xf32>
    %c0_11 = arith.constant 0 : index
    %c0_12 = arith.constant 0 : index
    %24 = vector.load %arg3[%c0_11, %c0_12] : memref<8x128xf32, #tpu.memory_space<vmem>>, vector<8x128xf32>
    %25 = arith.mulf %24, %23 : vector<8x128xf32>
    %cst = arith.constant dense<0.000000e+00> : vector<128xf32>
    %26 = vector.multi_reduction <add>, %25, %cst [0] : vector<8x128xf32> to vector<128xf32>
    %27 = vector.shape_cast %26 : vector<128xf32> to vector<1x128xf32>
    %cst_13 = arith.constant 9.99999971E-10 : f32
    %28 = vector.broadcast %cst_13 : f32 to vector<1x128xf32>
    %29 = arith.addf %27, %28 : vector<1x128xf32>
    %c0_14 = arith.constant 0 : index
    %c0_15 = arith.constant 0 : index
    %30 = vector.load %arg4[%c0_14, %c0_15] : memref<1x128xf32, #tpu.memory_space<vmem>>, vector<1x128xf32>
    tpu.vector_store %arg4[%c0_14, %c0_15], %29 {strides = array<i32>} : memref<1x128xf32, #tpu.memory_space<vmem>>, vector<1x128xf32>,
    return
  }
  func.func @transform_0(%arg0: i32) -> (i32, i32) {
    %c0_i32 = arith.constant 0 : i32
    %c0_i32_0 = arith.constant 0 : i32
    %c0_i32_1 = arith.constant 0 : i32
    return %c0_i32, %c0_i32_0 : i32, i32
  }
  func.func @transform_1(%arg0: i32) -> (i32, i32) {
    %c0_i32 = arith.constant 0 : i32
    %c0_i32_0 = arith.constant 0 : i32
    return %c0_i32, %arg0 : i32, i32
  }
  func.func @transform_2(%arg0: i32) -> (i32, i32) {
    %c0_i32 = arith.constant 0 : i32
    %c0_i32_0 = arith.constant 0 : i32
    return %c0_i32, %arg0 : i32, i32
  }
  func.func @transform_3(%arg0: i32) -> (i32, i32) {
    %c0_i32 = arith.constant 0 : i32
    %c0_i32_0 = arith.constant 0 : i32
    return %c0_i32, %arg0 : i32, i32
  }
}

</mosaic_0001>

<bundles_post_ra>
// kernel: tpu_custom_call.1
= control target key start
LH: loop header
LB: loop body
LE: loop exit
PB: predicated region body
PF: predicated region fallthrough
CT: control target
= control target key end

     0   :  { %8 = vsyncpa [#allocation3], 0  ;;  %s313_s0 = inlined_call_operand.hbm [shape: f32[8,8], index: 0, kind: input, shape index: {}]   ;;  %s314_s1 = inlined_call_operand.hbm [shape: f32[3,128], index: 1, kind: input, shape index: {}]   ;;  %s315_s2 = inlined_call_operand.hbm [shape: f32[8,128], index: 2, kind: input, shape index: {}]   ;;  %s316_s3 = inlined_call_operand.hbm [shape: f32[1,128], index: 3, kind: output, shape index: {}]  }
   0x1   :  { %9 = vsyncpa [#allocation6], 0 }
   0x2   :  { %10 = vsyncpa [#allocation4], 0  ;;  %s236_s12 = smov [#allocation5]   ;;  %s237_s14 = smov [#allocation2]  }
   0x3   :  { %s27_s13 = sshll.u32 %s236_s12, 4  ;;  %s17_s15 = sshll.u32 %s237_s14, 4  ;;  %s28_s13 = int_to_ptr.vmem [resolvable:$true] %s27_s13  ;;  %s18_s15 = int_to_ptr.vmem [resolvable:$true] %s17_s15 }
   0x4   :  { %s142_s18 = scalar_lea.hbm %s314_s1, 64 }
   0x5   :  { %p143_p0 = scmp.ne.s32.totalorder %s314_s1, %s142_s18  ;;  %p146_p1 = scmp.lt.u32.totalorder %s142_s18, %s314_s1 }
   0x7   :  { %p148_p2 = pnand %p146_p1, %p143_p0 }
   0x9   :  { %151 = shalt.err (!%p148_p2)
}
   0xa   :  { %s152_s23 = scalar_lea.vmem %s28_s13, 64  ;;  %p157_p4 = scmp.lt.s32.totalorder %s28_s13, %s28_s13 }
   0xb   :  { %p153_p3 = scmp.ne.s32.totalorder %s28_s13, %s152_s23  ;;  %p158_p5 = scmp.lt.s32.totalorder %s152_s23, %s152_s23 }
   0xd   :  { %p159_p6 = por %p158_p5, %p157_p4 }
   0xf   :  { %p160_p7 = pnand %p159_p6, %p153_p3 }
  0x11   :  { %163 = shalt.err (!%p160_p7)
}
  0x12   :  { %30 = dma.hbm_to_vmem [thread:$0]  %s314_s1, 64, %s28_s13, [#allocation6]  }
  0x13   :  { %s164_s28 = scalar_lea.hbm %s313_s0, 128 }
  0x14   :  { %p165_p8 = scmp.ne.s32.totalorder %s313_s0, %s164_s28  ;;  %p168_p9 = scmp.lt.u32.totalorder %s164_s28, %s313_s0 }
  0x16   :  { %p170_p10 = pnand %p168_p9, %p165_p8 }
  0x18   :  { %173 = shalt.err (!%p170_p10)
}
  0x19   :  { %s174_s6 = scalar_lea.vmem %s18_s15, 128  ;;  %p179_p12 = scmp.lt.s32.totalorder %s18_s15, %s18_s15 }
  0x1a   :  { %p175_p11 = scmp.ne.s32.totalorder %s18_s15, %s174_s6  ;;  %p180_p13 = scmp.lt.s32.totalorder %s174_s6, %s174_s6 }
  0x1c   :  { %p181_p0 = por %p180_p13, %p179_p12 }
  0x1e   :  { %p182_p1 = pnand %p181_p0, %p175_p11 }
  0x20   :  { %185 = shalt.err (!%p182_p1)
}
  0x21   :  { %20 = dma.hbm_to_vmem [thread:$0]  %s313_s0, 128, %s18_s15, [#allocation3]  }
  0x22   :  { %s238_s8 = smov [#allocation7]   ;;  %s186_s12 = scalar_lea.hbm %s315_s2, 128 }
  0x23   :  { %s37_s9 = sshll.u32 %s238_s8, 4  ;;  %p187_p2 = scmp.ne.s32.totalorder %s315_s2, %s186_s12  ;;  %s38_s9 = int_to_ptr.vmem [resolvable:$true] %s37_s9 }
  0x24   :  { %p190_p3 = scmp.lt.u32.totalorder %s186_s12, %s315_s2 }
  0x26   :  { %p192_p4 = pnand %p190_p3, %p187_p2 }
  0x28   :  { %195 = shalt.err (!%p192_p4)
}
  0x29   :  { %s196_s18 = scalar_lea.vmem %s38_s9, 128  ;;  %p201_p6 = scmp.lt.s32.totalorder %s38_s9, %s38_s9 }
  0x2a   :  { %p197_p5 = scmp.ne.s32.totalorder %s38_s9, %s196_s18  ;;  %p202_p7 = scmp.lt.s32.totalorder %s196_s18, %s196_s18 }
  0x2c   :  { %p203_p8 = por %p202_p7, %p201_p6 }
  0x2e   :  { %p204_p9 = pnand %p203_p8, %p197_p5 }
  0x30   :  { %207 = shalt.err (!%p204_p9)
}
  0x31   :  { %40 = dma.hbm_to_vmem [thread:$0]  %s315_s2, 128, %s38_s9, [#allocation6]  }
  0x32   :  { %230 = dma.done.wait [#allocation3], 128  }
  0x33   :  { %231 = vsyncadd [#allocation3], 4294967168 }
  0x34   :  { %232 = dma.done.wait [#allocation6], 192  }
  0x35   :  { %233 = vsyncadd [#allocation6], 4294967104  ;;  %v239_v0 = vmov 0   ;;  %v240_v1 = vmov 2   ;;  %v53_v2 = vld [vmem:[#allocation2] sm:$0xff]  ;;  %v241_v3 = vmov 1  }
  0x36   :  { %134 = vset.pattern.permute.xlu0 %v239_v0  ;;  %136 = vset.pattern.permute.xlu1 %v240_v1  ;;  %v242_v4 = vmov 3   ;;  %v243_v5 = vmov 4   ;;  %v122_v8 = vld [vmem:[#allocation5] ss:$0 sm:$0xff]  ;;  %v123_v9 = vld [vmem:[#allocation5 + $0x1] ss:$0 sm:$0xff] }
  0x37   :  { %56 = vperm.xlu0 %134, %v53_v2   ;;  %75 = vperm.xlu1 %136, %v53_v2   ;;  %v124_v10 = vld [vmem:[#allocation5 + $0x2] ss:$0 sm:$0xff]  ;;  %v96_v22 = vld [vmem:[#allocation7] sm:$0xff]  ;;  %s244_s2 = smov [#allocation8]  }
  0x38   :  { %s112_s19 = sshll.u32 %s244_s2, 4  ;;  %s113_s19 = int_to_ptr.vmem [resolvable:$true] %s112_s19 }
  0x39   :  { %s208_s20 = scalar_lea.vmem %s113_s19, 16  ;;  %s212_s21 = scalar_lea.vmem %s113_s19, 32 }
  0x3a   :  { %p209_p10 = scmp.ne.s32.totalorder %s113_s19, %s208_s20  ;;  %p213_p11 = scmp.lt.s32.totalorder %s113_s19, %s113_s19 }
  0x3b   :  { %135 = vset.pattern.permute.xlu0 %v241_v3  ;;  %137 = vset.pattern.permute.xlu1 %v242_v4  ;;  %p214_p12 = scmp.lt.s32.totalorder %s212_s21, %s208_s20 }
  0x3c   :  { %65 = vperm.xlu0 %135, %v53_v2   ;;  %85 = vperm.xlu1 %137, %v53_v2  }
  0x3d   :  { %p215_p13 = por %p214_p12, %p213_p11 }
  0x3f   :  { %p216_p0 = pnand %p215_p13, %p209_p10 }
  0x40   :  { %138 = vset.pattern.permute.xlu1 %v243_v5  ;;  %139 = vset.pattern.permute.xlu0 %v243_v5 }
  0x41   :  { %90 = vperm.xlu1 %138, %v53_v2  }
  0xb6   :  { %v57_v6 = vpop.permute.xlu0 %56  ;;  %v76_v7 = vpop.permute.xlu1 %75 }
  0xb7   :  { %v63_v13 = vmul.f32 %v122_v8, %v57_v6  ;;  %v82_v15 = vmul.f32 %v124_v10, %v76_v7 }
  0xbb   :  { %v66_v11 = vpop.permute.xlu0 %65  ;;  %v86_v12 = vpop.permute.xlu1 %85 }
  0xbc   :  { %v72_v14 = vmul.f32 %v123_v9, %v66_v11 }
  0xbe   :  { %v73_v16 = vadd.f32 %v72_v14, %v63_v13 }
  0xc0   :  { %v83_v17 = vadd.f32 %v82_v15, %v73_v16  ;;  %v91_v18 = vpop.permute.xlu1 %90 }
  0xc2   :  { %v88_v19 = vmul.f32 %v86_v12, %v83_v17 }
  0xc4   :  { %v93_v20 = vadd.f32 %v91_v18, %v88_v19 }
  0xc6   :  { %v94_v21 = vmul.f32 1.442695, %v93_v20 }
  0xc8   :  { %140 = vpow2.f32 %v94_v21 }
  0xd2   :  { %v141_v23 = vpop.eup %140 }
  0xd3   :  { %v97_v24 = vmul.f32 %v141_v23, %v96_v22 }
  0xd5   :  { %v98_v25 = vrot.slane %v97_v24, 4 }
  0xd7   :  { %v99_v26 = vadd.f32 %v98_v25, %v97_v24 }
  0xd9   :  { %v100_v27 = vrot.slane %v99_v26, 2 }
  0xdb   :  { %v101_v28 = vadd.f32 %v100_v27, %v99_v26 }
  0xdd   :  { %v102_v29 = vrot.slane %v101_v28, 1 }
  0xdf   :  { %v103_v30 = vadd.f32 %v102_v29, %v101_v28 }
  0xe1   :  { %v104_v31 = vadd.f32 1e-09, %v103_v30 }
  0xe3   :  { %105 = vst [vmem:[#allocation8] sm:$0x1] %v104_v31 }
  0xe4   :  { %219 = shalt.err (!%p216_p0)
}
  0xe5   :  { %s220_s24 = scalar_lea.hbm %s316_s3, 16 }
  0xe6   :  { %p221_p1 = scmp.ne.s32.totalorder %s316_s3, %s220_s24  ;;  %p224_p2 = scmp.lt.u32.totalorder %s220_s24, %s316_s3 }
  0xe8   :  { %p226_p3 = pnand %p224_p2, %p221_p1 }
  0xea   :  { %229 = shalt.err (!%p226_p3)
}
  0xeb   :  { %115 = dma.vmem_to_hbm [thread:$0]  %s113_s19, 16, %s316_s3, [#allocation4]  }
  0xec   :  { %234 = dma.done.wait [#allocation4], 16  }
  0xed   :  { %235 = vsyncadd [#allocation4], 4294967280 }
  0xee   :  { %119 = vsyncpa [#allocation3], 1 }
  0xef   :  { %120 = vsyncpa [#allocation6], 1 }
  0xf0   :  { %121 = vsyncpa [#allocation4], 1 }

</bundles_post_ra>
